<compile_context>
chip_gen: v7x
topology: tpu7x:2x2x1
jax: 0.10.0
libtpu: 0.0.40
codegen_flags: <defaults>
</compile_context>

<pallas_src>
import jax
import jax.numpy as jnp
from jax.experimental import pallas as pl
from jax.experimental.pallas import tpu as pltpu


def _round_up(v, m):
    return ((v + m - 1) // m) * m


# --------------------------------------------------------------------------- #
# Kernel: one (optionally K-tiled) MXU matmul with an f32 accumulator.
#   grid = (batch, spatial tiles, CKK tiles) -> ("parallel","parallel","arbitrary")
#   p_ref : [TK,  TS]   im2col patch tile (lane-dense spatial)
#   wc_ref: [OCp, TK]   fused (alpha/r)*Wu@Wd weight tile
#   bc_ref: [OCp, 1]    fused bias
#   o_ref : [OCp, TS]   output tile (already in NCHW spatial order)
# --------------------------------------------------------------------------- #
def _conv_lora_kernel(p_ref, wc_ref, bc_ref, o_ref, acc_ref):
    k = pl.program_id(2)

    @pl.when(k == 0)
    def _():
        acc_ref[...] = jnp.zeros_like(acc_ref)

    acc_ref[...] += jnp.dot(wc_ref[...], p_ref[...],
                            preferred_element_type=jnp.float32)

    @pl.when(k == pl.num_programs(2) - 1)
    def _():
        o_ref[...] = (acc_ref[...] + bc_ref[...].astype(jnp.float32)
                      ).astype(o_ref.dtype)


def _im2col_nchw_spatial_minor(x, kh, kw, stride, pad):
    """x: [N, C, H, W] -> patches [N, KH*KW*C, OH*OW]  (no big transpose).

    Patch-row ordering is (kh, kw, c); the column index is the flattened
    (oh, ow) in NCHW spatial order, so the kernel result reshapes straight to
    [N, OC, OH, OW].
    """
    n, c, h, w = x.shape
    oh = (h + 2 * pad - kh) // stride + 1
    ow = (w + 2 * pad - kw) // stride + 1
    xp = jnp.pad(x, ((0, 0), (0, 0), (pad, pad), (pad, pad)))
    cols = []
    for i in range(kh):
        for j in range(kw):
            sl = xp[:, :, i:i + (oh - 1) * stride + 1:stride,
                    j:j + (ow - 1) * stride + 1:stride]      # [N, C, OH, OW]
            cols.append(sl)
    p = jnp.stack(cols, axis=1)                              # [N, KH*KW, C, OH, OW]
    return p.reshape(n, kh * kw * c, oh * ow), oh, ow


def _vmem_caps():
    """(tile_budget_bytes, vmem_limit_bytes) sized from the local chip's VMEM.

    v5e/v6e expose 128 MiB per TensorCore, v7x 64 MiB.  If the query is not
    available we size for the smallest (v7x) so the kernel fits everywhere.
    """
    cap = 64 * 1024 * 1024
    try:
        info = pltpu.get_tpu_info()
        cap = int(getattr(info, "vmem_capacity_bytes", cap)) or cap
    except Exception:
        pass
    budget = (cap * 7) // 10          # what the tile-sizing model may consume
    limit = (cap * 7) // 8            # scoped limit handed to Mosaic (headroom
                                      # for internal scratch / un-hinted buffers)
    return budget, limit


def _pick_tiles(ohw, ckk, oc_pad, itemsize, budget, n_batch, w_buf):
    """Choose (ts, nst, tk, nkt) so the per-step working set fits `budget`.

    Per-grid-step VMEM model (bytes):
      patches: 2 * tk * ts * itemsize              (double-buffered stream)
      weight : w_buf * oc_pad * tk * itemsize      (1 buffer when grid-invariant)
      out    : 2 * oc_pad * ts * itemsize
      acc    : oc_pad * ts * 4                     (f32 scratch)
    """
    TS_CAP = 8192  # lane-dense cap: amortizes ~0.35us/step without huge steps

    # --- Preferred: no K tiling (whole CKK resident, weight loaded once). ---
    w_bytes = w_buf * oc_pad * ckk * itemsize
    denom = itemsize * (2 * ckk + 2 * oc_pad) + 4 * oc_pad
    ts_fit = ((budget - w_bytes) // denom // 128) * 128
    if ts_fit >= 128:
        ts_max = min(ts_fit, TS_CAP)
        nst = pl.cdiv(ohw, ts_max)
        if n_batch * nst < 2 and ohw > 128:     # v7x megacore: >=2 parallel steps
            nst = 2
        ts = _round_up(pl.cdiv(ohw, nst), 128)  # even split -> minimal padding
        return ts, nst, ckk, 1

    # --- K tiling: fix a lane-dense spatial tile, solve for a 128-aligned TK
    #     (the weight now streams along k, so it is double-buffered). ---
    for ts_target in (1024, 512, 256, 128):
        nst = max(1, pl.cdiv(ohw, ts_target))
        if n_batch * nst < 2 and ohw > 128:
            nst = 2
        ts = _round_up(pl.cdiv(ohw, nst), 128)
        fixed = 2 * oc_pad * ts * itemsize + 4 * oc_pad * ts
        tk_fit = ((budget - fixed) // (itemsize * (2 * ts + 2 * oc_pad)) // 128) * 128
        if tk_fit >= 128:
            tk = min(tk_fit, _round_up(ckk, 128))
            return ts, nst, tk, pl.cdiv(ckk, tk)

    # Last resort: smallest legal tiles.
    return 128, pl.cdiv(ohw, 128), 128, pl.cdiv(ckk, 128)


def _spec(shape, index_map, buffers=None):
    """BlockSpec, optionally with a pipeline-depth hint.

    Grid-invariant operands (constant index_map) only need a single VMEM
    buffer; double-buffering them is pure VMEM waste."""
    if buffers is None:
        return pl.BlockSpec(shape, index_map)
    try:
        return pl.BlockSpec(shape, index_map, pipeline_mode=pl.Buffered(buffers))
    except TypeError:   # older jax: pipeline_mode kwarg not available
        return pl.BlockSpec(shape, index_map)


def conv_lora_forward(x, wd, bd, wu, bu, *, stride, pad, alpha, r):
    """x: [N,C,H,W]; wd: [r,C,KH,KW]; bd: [r]; wu: [OC,r,1,1]; bu: [OC]."""
    n, c, h, w = x.shape
    rr, _, kh, kw = wd.shape
    oc = wu.shape[0]
    assert rr == r
    scale = float(alpha) / float(r)
    dt = x.dtype
    itemsize = jnp.dtype(dt).itemsize

    # ---- Fold downConv + upConv + alpha/r into one weight / bias (f32 math). ----
    ckk = kh * kw * c
    wd_r = wd.transpose(2, 3, 1, 0).reshape(ckk, r)         # row = (i*KW + j)*C + c
    wu_m = wu.reshape(oc, r)
    wc_t = scale * jnp.dot(wu_m.astype(jnp.float32), wd_r.astype(jnp.float32).T,
                           preferred_element_type=jnp.float32)          # [OC, CKK]
    bc = scale * (jnp.dot(wu_m.astype(jnp.float32), bd.astype(jnp.float32))
                  + bu.astype(jnp.float32))                             # [OC]
    wc_t = wc_t.astype(dt)
    bc = bc.reshape(oc, 1).astype(dt)

    # Pad OC to the dtype sublane multiple -> full-sublane (unmasked) stores.
    oc_pad = _round_up(oc, {4: 8, 2: 16, 1: 32}.get(itemsize, 8))
    if oc_pad != oc:
        wc_t = jnp.pad(wc_t, ((0, oc_pad - oc), (0, 0)))
        bc = jnp.pad(bc, ((0, oc_pad - oc), (0, 0)))

    # ---- im2col with the flattened spatial dim last (lane-dense). ----
    patches, oh, ow = _im2col_nchw_spatial_minor(x, kh, kw, stride, pad)
    ohw = oh * ow

    # ---- VMEM-budget-driven tiling (per chip generation, not constants). ----
    budget, vmem_limit = _vmem_caps()
    w_buf = 1 if hasattr(pl, "Buffered") else 2
    ts, nst, tk, nkt = _pick_tiles(ohw, ckk, oc_pad, itemsize, budget, n, w_buf)
    ohw_pad, ckk_pad = nst * ts, nkt * tk
    if ohw_pad != ohw:
        patches = jnp.pad(patches, ((0, 0), (0, 0), (0, ohw_pad - ohw)))
    if ckk_pad != ckk:                  # zero K-columns contribute nothing
        patches = jnp.pad(patches, ((0, 0), (0, ckk_pad - ckk), (0, 0)))
        wc_t = jnp.pad(wc_t, ((0, 0), (0, ckk_pad - ckk)))

    grid = (n, nst, nkt)

    def build(hint_single_buffer):
        nbuf = 1 if hint_single_buffer else None
        return pl.pallas_call(
            _conv_lora_kernel,
            out_shape=jax.ShapeDtypeStruct((n, oc_pad, ohw_pad), dt),
            grid_spec=pltpu.PrefetchScalarGridSpec(
                num_scalar_prefetch=0,
                grid=grid,
                in_specs=[
                    pl.BlockSpec((None, tk, ts), lambda b, s, k: (b, k, s)),
                    _spec((oc_pad, tk), lambda b, s, k: (0, k), buffers=nbuf),
                    _spec((oc_pad, 1), lambda b, s, k: (0, 0), buffers=nbuf),
                ],
                out_specs=pl.BlockSpec((None, oc_pad, ts),
                                       lambda b, s, k: (b, 0, s)),
                scratch_shapes=[pltpu.VMEM((oc_pad, ts), jnp.float32)],
            ),
            compiler_params=pltpu.CompilerParams(
                dimension_semantics=("parallel", "parallel", "arbitrary"),
                vmem_limit_bytes=int(vmem_limit)),
        )

    out = None
    if nkt == 1 and hasattr(pl, "Buffered"):
        # Weight/bias index maps are grid-constant -> one VMEM buffer each.
        try:
            out = build(True)(patches, wc_t, bc)
        except Exception:   # compatibility guard: fall back to default buffering
            out = None
    if out is None:
        out = build(False)(patches, wc_t, bc)

    # Padded OC rows / spatial columns are sliced off; result is already NCHW.
    return out[:, :oc, :ohw].reshape(n, oc, oh, ow)


def _reference(x, wd, bd, wu, bu, *, stride, pad, alpha, r):
    """Pure-JAX reference using lax.conv (NCHW / OIHW, same as PyTorch)."""
    dn = jax.lax.conv_dimension_numbers(x.shape, wd.shape, ("NCHW", "OIHW", "NCHW"))
    down = jax.lax.conv_general_dilated(
        x, wd, window_strides=(stride, stride),
        padding=((pad, pad), (pad, pad)), dimension_numbers=dn)
    down = down + bd.reshape(1, -1, 1, 1)
    dn2 = jax.lax.conv_dimension_numbers(down.shape, wu.shape, ("NCHW", "OIHW", "NCHW"))
    up = jax.lax.conv_general_dilated(
        down, wu, window_strides=(1, 1), padding=((0, 0), (0, 0)),
        dimension_numbers=dn2)
    up = up + bu.reshape(1, -1, 1, 1)
    return (alpha / r) * up


if __name__ == "__main__":
    # frozen_conv config: in_channels=4, out_channels=8, kernel 3x3, stride 1, pad 1
    N, C, H, W = 2, 4, 16, 16
    OC, KH, KW = 8, 3, 3
    STRIDE, PAD = 1, 1
    R, ALPHA = 2, 2

    key = jax.random.PRNGKey(0)
    kx, kwd, kbd, kwu, kbu = jax.random.split(key, 5)

    x = jax.random.normal(kx, (N, C, H, W), dtype=jnp.float32)
    wd = 0.1 * jax.random.normal(kwd, (R, C, KH, KW), dtype=jnp.float32)   # downConv.weight
    bd = 0.1 * jax.random.normal(kbd, (R,), dtype=jnp.float32)             # downConv.bias
    wu = 0.1 * jax.random.normal(kwu, (OC, R, 1, 1), dtype=jnp.float32)    # upConv.weight
    bu = 0.1 * jax.random.normal(kbu, (OC,), dtype=jnp.float32)            # upConv.bias

    out = conv_lora_forward(x, wd, bd, wu, bu,
                            stride=STRIDE, pad=PAD, alpha=ALPHA, r=R)
    out = jax.block_until_ready(out)

    ref = _reference(x, wd, bd, wu, bu, stride=STRIDE, pad=PAD, alpha=ALPHA, r=R)
    assert out.shape == (N, OC, H, W), out.shape
    assert jnp.allclose(out, ref, atol=1e-4, rtol=1e-4), "mismatch vs reference"

    print("KERNEL_OK")
</pallas_src>

<mosaic_0001>
module attributes {stable_mosaic.version = 11 : i64} {
  func.func @_conv_lora_kernel(%arg0: i32, %arg1: i32, %arg2: i32, %arg3: memref<1x36x256xf32, #tpu.memory_space<vmem>>, %arg4: memref<8x36xf32, #tpu.memory_space<vmem>>, %arg5: memref<8x1xf32, #tpu.memory_space<vmem>>, %arg6: memref<1x8x256xf32, #tpu.memory_space<vmem>>, %arg7: memref<8x256xf32, #tpu.memory_space<vmem>>) attributes {dimension_semantics = [#tpu.dimension_semantics<parallel>, #tpu.dimension_semantics<parallel>, #tpu.dimension_semantics<arbitrary>], iteration_bounds = array<i64: 2, 1, 1>, scalar_prefetch = 0 : i64, scratch_operands = 1 : i64, tpu.core_type = #tpu.core_type<tc>, window_params = [{transform_indices = @transform_0, window_bounds = array<i64: 1, 36, 256>}, {pipeline_mode = #tpu.pipeline_mode<synchronous>, transform_indices = @transform_1, window_bounds = array<i64: 8, 36>}, {pipeline_mode = #tpu.pipeline_mode<synchronous>, transform_indices = @transform_2, window_bounds = array<i64: 8, 1>}, {transform_indices = @transform_3, window_bounds = array<i64: 1, 8, 256>}]} {
    %c0_i32 = arith.constant 0 : i32
    %0 = arith.cmpi eq, %arg2, %c0_i32 : i32
    %1 = arith.extui %0 : i1 to i32
    %c0_i32_0 = arith.constant 0 : i32
    %2 = arith.cmpi ne, %1, %c0_i32_0 : i32
    scf.if %2 {
      %cst_11 = arith.constant 0.000000e+00 : f32
      %13 = vector.broadcast %cst_11 : f32 to vector<8x256xf32>
      %c0_12 = arith.constant 0 : index
      %c0_13 = arith.constant 0 : index
      %14 = vector.load %arg7[%c0_12, %c0_13] : memref<8x256xf32, #tpu.memory_space<vmem>>, vector<8x256xf32>
      tpu.vector_store %arg7[%c0_12, %c0_13], %13 {strides = array<i32>} : memref<8x256xf32, #tpu.memory_space<vmem>>, vector<8x256xf32>,
    } else {
    }
    %c0 = arith.constant 0 : index
    %c0_1 = arith.constant 0 : index
    %3 = vector.load %arg7[%c0, %c0_1] : memref<8x256xf32, #tpu.memory_space<vmem>>, vector<8x256xf32>
    %c0_2 = arith.constant 0 : index
    %c0_3 = arith.constant 0 : index
    %4 = vector.load %arg4[%c0_2, %c0_3] : memref<8x36xf32, #tpu.memory_space<vmem>>, vector<8x36xf32>
    %c0_4 = arith.constant 0 : index
    %c0_5 = arith.constant 0 : index
    %c0_6 = arith.constant 0 : index
    %5 = vector.load %arg3[%c0_4, %c0_5, %c0_6] : memref<1x36x256xf32, #tpu.memory_space<vmem>>, vector<1x36x256xf32>
    %6 = vector.shape_cast %5 : vector<1x36x256xf32> to vector<36x256xf32>
    %cst = arith.constant dense<0.000000e+00> : vector<8x256xf32>
    %7 = tpu.matmul %4, %6, %cst {dimension_numbers = #tpu.dot_dimension_numbers<[1], [0], [0], [1], [0, 0, 1, 1], [], []>} : vector<8x36xf32>, vector<36x256xf32>, vector<8x256xf32> -> vector<8x256xf32>
    %8 = arith.addf %3, %7 : vector<8x256xf32>
    %c0_7 = arith.constant 0 : index
    %c0_8 = arith.constant 0 : index
    %9 = vector.load %arg7[%c0_7, %c0_8] : memref<8x256xf32, #tpu.memory_space<vmem>>, vector<8x256xf32>
    tpu.vector_store %arg7[%c0_7, %c0_8], %8 {strides = array<i32>} : memref<8x256xf32, #tpu.memory_space<vmem>>, vector<8x256xf32>,
    %c0_i32_9 = arith.constant 0 : i32
    %10 = arith.cmpi eq, %arg2, %c0_i32_9 : i32
    %11 = arith.extui %10 : i1 to i32
    %c0_i32_10 = arith.constant 0 : i32
    %12 = arith.cmpi ne, %11, %c0_i32_10 : i32
    scf.if %12 {
      %c0_11 = arith.constant 0 : index
      %c0_12 = arith.constant 0 : index
      %13 = vector.load %arg7[%c0_11, %c0_12] : memref<8x256xf32, #tpu.memory_space<vmem>>, vector<8x256xf32>
      %c0_13 = arith.constant 0 : index
      %c0_14 = arith.constant 0 : index
      %14 = vector.load %arg5[%c0_13, %c0_14] : memref<8x1xf32, #tpu.memory_space<vmem>>, vector<8x1xf32>
      %15 = vector.broadcast %14 : vector<8x1xf32> to vector<8x256xf32>
      %16 = arith.addf %13, %15 : vector<8x256xf32>
      %c0_15 = arith.constant 0 : index
      %c0_16 = arith.constant 0 : index
      %c0_17 = arith.constant 0 : index
      %17 = vector.load %arg6[%c0_15, %c0_16, %c0_17] : memref<1x8x256xf32, #tpu.memory_space<vmem>>, vector<1x8x256xf32>
      %18 = vector.shape_cast %17 : vector<1x8x256xf32> to vector<8x256xf32>
      %19 = vector.shape_cast %16 : vector<8x256xf32> to vector<1x8x256xf32>
      tpu.vector_store %arg6[%c0_15, %c0_16, %c0_17], %19 {strides = array<i32>} : memref<1x8x256xf32, #tpu.memory_space<vmem>>, vector<1x8x256xf32>,
    } else {
    }
    return
  }
  func.func @transform_0(%arg0: i32, %arg1: i32, %arg2: i32) -> (i32, i32, i32) {
    %c0_i32 = arith.constant 0 : i32
    return %arg0, %arg2, %arg1 : i32, i32, i32
  }
  func.func @transform_1(%arg0: i32, %arg1: i32, %arg2: i32) -> (i32, i32) {
    %c0_i32 = arith.constant 0 : i32
    %c0_i32_0 = arith.constant 0 : i32
    return %c0_i32, %arg2 : i32, i32
  }
  func.func @transform_2(%arg0: i32, %arg1: i32, %arg2: i32) -> (i32, i32) {
    %c0_i32 = arith.constant 0 : i32
    %c0_i32_0 = arith.constant 0 : i32
    %c0_i32_1 = arith.constant 0 : i32
    return %c0_i32, %c0_i32_0 : i32, i32
  }
  func.func @transform_3(%arg0: i32, %arg1: i32, %arg2: i32) -> (i32, i32, i32) {
    %c0_i32 = arith.constant 0 : i32
    %c0_i32_0 = arith.constant 0 : i32
    return %arg0, %c0_i32, %arg1 : i32, i32, i32
  }
}

module attributes {stable_mosaic.version = 11 : i64} {
  func.func @_conv_lora_kernel(%arg0: i32, %arg1: i32, %arg2: i32, %arg3: memref<1x36x256xf32, #tpu.memory_space<vmem>>, %arg4: memref<8x36xf32, #tpu.memory_space<vmem>>, %arg5: memref<8x1xf32, #tpu.memory_space<vmem>>, %arg6: memref<1x8x256xf32, #tpu.memory_space<vmem>>, %arg7: memref<8x256xf32, #tpu.memory_space<vmem>>) attributes {dimension_semantics = [#tpu.dimension_semantics<parallel>, #tpu.dimension_semantics<parallel>, #tpu.dimension_semantics<arbitrary>], iteration_bounds = array<i64: 2, 1, 1>, scalar_prefetch = 0 : i64, scratch_operands = 1 : i64, tpu.core_type = #tpu.core_type<tc>, window_params = [{transform_indices = @transform_0, window_bounds = array<i64: 1, 36, 256>}, {transform_indices = @transform_1, window_bounds = array<i64: 8, 36>}, {pipeline_mode = #tpu.pipeline_mode<synchronous>, transform_indices = @transform_2, window_bounds = array<i64: 8, 1>}, {transform_indices = @transform_3, window_bounds = array<i64: 1, 8, 256>}]} {
    %c0_i32 = arith.constant 0 : i32
    %0 = arith.cmpi eq, %arg2, %c0_i32 : i32
    %1 = arith.extui %0 : i1 to i32
    %c0_i32_0 = arith.constant 0 : i32
    %2 = arith.cmpi ne, %1, %c0_i32_0 : i32
    scf.if %2 {
      %cst_11 = arith.constant 0.000000e+00 : f32
      %13 = vector.broadcast %cst_11 : f32 to vector<8x256xf32>
      %c0_12 = arith.constant 0 : index
      %c0_13 = arith.constant 0 : index
      %14 = vector.load %arg7[%c0_12, %c0_13] : memref<8x256xf32, #tpu.memory_space<vmem>>, vector<8x256xf32>
      tpu.vector_store %arg7[%c0_12, %c0_13], %13 {strides = array<i32>} : memref<8x256xf32, #tpu.memory_space<vmem>>, vector<8x256xf32>,
    } else {
    }
    %c0 = arith.constant 0 : index
    %c0_1 = arith.constant 0 : index
    %3 = vector.load %arg7[%c0, %c0_1] : memref<8x256xf32, #tpu.memory_space<vmem>>, vector<8x256xf32>
    %c0_2 = arith.constant 0 : index
    %c0_3 = arith.constant 0 : index
    %4 = vector.load %arg4[%c0_2, %c0_3] : memref<8x36xf32, #tpu.memory_space<vmem>>, vector<8x36xf32>
    %c0_4 = arith.constant 0 : index
    %c0_5 = arith.constant 0 : index
    %c0_6 = arith.constant 0 : index
    %5 = vector.load %arg3[%c0_4, %c0_5, %c0_6] : memref<1x36x256xf32, #tpu.memory_space<vmem>>, vector<1x36x256xf32>
    %6 = vector.shape_cast %5 : vector<1x36x256xf32> to vector<36x256xf32>
    %cst = arith.constant dense<0.000000e+00> : vector<8x256xf32>
    %7 = tpu.matmul %4, %6, %cst {dimension_numbers = #tpu.dot_dimension_numbers<[1], [0], [0], [1], [0, 0, 1, 1], [], []>} : vector<8x36xf32>, vector<36x256xf32>, vector<8x256xf32> -> vector<8x256xf32>
    %8 = arith.addf %3, %7 : vector<8x256xf32>
    %c0_7 = arith.constant 0 : index
    %c0_8 = arith.constant 0 : index
    %9 = vector.load %arg7[%c0_7, %c0_8] : memref<8x256xf32, #tpu.memory_space<vmem>>, vector<8x256xf32>
    tpu.vector_store %arg7[%c0_7, %c0_8], %8 {strides = array<i32>} : memref<8x256xf32, #tpu.memory_space<vmem>>, vector<8x256xf32>,
    %c0_i32_9 = arith.constant 0 : i32
    %10 = arith.cmpi eq, %arg2, %c0_i32_9 : i32
    %11 = arith.extui %10 : i1 to i32
    %c0_i32_10 = arith.constant 0 : i32
    %12 = arith.cmpi ne, %11, %c0_i32_10 : i32
    scf.if %12 {
      %c0_11 = arith.constant 0 : index
      %c0_12 = arith.constant 0 : index
      %13 = vector.load %arg7[%c0_11, %c0_12] : memref<8x256xf32, #tpu.memory_space<vmem>>, vector<8x256xf32>
      %c0_13 = arith.constant 0 : index
      %c0_14 = arith.constant 0 : index
      %14 = vector.load %arg5[%c0_13, %c0_14] : memref<8x1xf32, #tpu.memory_space<vmem>>, vector<8x1xf32>
      %15 = vector.broadcast %14 : vector<8x1xf32> to vector<8x256xf32>
      %16 = arith.addf %13, %15 : vector<8x256xf32>
      %c0_15 = arith.constant 0 : index
      %c0_16 = arith.constant 0 : index
      %c0_17 = arith.constant 0 : index
      %17 = vector.load %arg6[%c0_15, %c0_16, %c0_17] : memref<1x8x256xf32, #tpu.memory_space<vmem>>, vector<1x8x256xf32>
      %18 = vector.shape_cast %17 : vector<1x8x256xf32> to vector<8x256xf32>
      %19 = vector.shape_cast %16 : vector<8x256xf32> to vector<1x8x256xf32>
      tpu.vector_store %arg6[%c0_15, %c0_16, %c0_17], %19 {strides = array<i32>} : memref<1x8x256xf32, #tpu.memory_space<vmem>>, vector<1x8x256xf32>,
    } else {
    }
    return
  }
  func.func @transform_0(%arg0: i32, %arg1: i32, %arg2: i32) -> (i32, i32, i32) {
    %c0_i32 = arith.constant 0 : i32
    return %arg0, %arg2, %arg1 : i32, i32, i32
  }
  func.func @transform_1(%arg0: i32, %arg1: i32, %arg2: i32) -> (i32, i32) {
    %c0_i32 = arith.constant 0 : i32
    %c0_i32_0 = arith.constant 0 : i32
    return %c0_i32, %arg2 : i32, i32
  }
  func.func @transform_2(%arg0: i32, %arg1: i32, %arg2: i32) -> (i32, i32) {
    %c0_i32 = arith.constant 0 : i32
    %c0_i32_0 = arith.constant 0 : i32
    %c0_i32_1 = arith.constant 0 : i32
    return %c0_i32, %c0_i32_0 : i32, i32
  }
  func.func @transform_3(%arg0: i32, %arg1: i32, %arg2: i32) -> (i32, i32, i32) {
    %c0_i32 = arith.constant 0 : i32
    %c0_i32_0 = arith.constant 0 : i32
    return %arg0, %c0_i32, %arg1 : i32, i32, i32
  }
}

</mosaic_0001>

<bundles_post_ra>
// kernel: tpu_custom_call.1
= control target key start
LH: loop header
LB: loop body
LE: loop exit
PB: predicated region body
PF: predicated region fallthrough
CT: control target
= control target key end

     0   :  { %8 = vsyncpa [#allocation4], 0  ;;  %s785_s0 = inlined_call_operand.vmem [shape: f32[2,36,256], index: 0, kind: input, shape index: {}]   ;;  %s786_s1 = inlined_call_operand.vmem [shape: f32[8,36], index: 1, kind: input, shape index: {}]   ;;  %s787_s2 = inlined_call_operand.vmem [shape: f32[8,1], index: 2, kind: input, shape index: {}]   ;;  %s788_s3 = inlined_call_operand.hbm [shape: f32[2,8,256], index: 3, kind: output, shape index: {}]  }
   0x1   :  { %10 = vsyncpa [#allocation4 + $0x1], 0  ;;  %s667_s12 = smov 0   ;;  %s669_s13 = smov 0  }
   0x2   :  { %s671_s14 = smov 0   ;;  %s673_s15 = smov 0  }
   0x3   :  { %s675_s16 = smov 0   ;;  %s677_s17 = smov 0  }
   0x4 LB: > { %s480_s18 = sadd.s32 4294967295, %s642_s17   ;;  %s481_s19 = sadd.s32 4294967294, %s642_s17   ;;  %s642_s17 = sphi %s677_s17, %s16_s17   ;;  %s638_s16 = sphi %s675_s16, %s795_s16   ;;  %s634_s15 = sphi %s673_s15, %s794_s15   ;;  %s630_s14 = sphi %s671_s14, %s793_s14   ;;  %s626_s13 = sphi %s669_s13, %s792_s13   ;;  %s622_s12 = sphi %s667_s12, %s791_s12  }
   0x5   : > { %s35_s20 = sadd.s32 1, %s638_s16  ;;  %s121_s21 = sadd.s32 1, %s630_s14 }
   0x6   : > { %p37_p0 = scmp.ge.s32.totalorder %s35_s20, 2  ;;  %p131_p1 = scmp.ne.s32.totalorder %s630_s14, %s626_s13 }
   0x7   : > { %p132_p2 = scmp.eq.s32.totalorder %s480_s18, 1  ;;  %p137_p3 = scmp.ne.s32.totalorder %s626_s13, %s622_s12 }
   0x8   : > { %s797_s20 = smov (%p37_p0, %s35_s20), 0  ;;  %p138_p5 = scmp.eq.s32.totalorder %s481_s19, 1 }
   0x9   : > { %p707_p4 = por %p132_p2, %p131_p1  ;;  %s116_s23 = ssub.s32 %s638_s16, %s797_s20 }
   0xa   : > { %p485_p6 = scmp.ge.s32.totalorder %s642_s17, 1  ;;  %p119_p7 = scmp.eq.s32.totalorder %s116_s23, 0 }
   0xb   : > { %p714_p8 = por %p138_p5, %p137_p3  ;;  %p185_p9 = scmp.lt.s32.totalorder %s642_s17, 3 }
   0xc   : > { %s720_s25 = scalar_select %p119_p7, %s630_s14, %s121_s21  }
   0xd   : > { %p186_p10 = pnand %p485_p6, %p185_p9 }
   0xe   : > { %p224_p11 = scmp.lt.s32.totalorder (!%p186_p10), %s634_s15, 1  ;;  %v644_v0 = vmov (!%p186_p10), 0.0   ;;  %v645_v1 = vmov (!%p186_p10), 0   ;;  %v353_v2 = vld [vmem:[%s787_s2] sm:$0xff] (!%p186_p10)  ;;  %vm266_vm0 = vcmask (!%p186_p10), 1043456   ;;  %vm262_vm1 = vcmask (!%p186_p10), 293888  }
   0xf   : > { %189 = sbr.rel (%p186_p10) target bundleno = 269 (0x10d), region = 32  ;;  %337 = vmatprep.mubr.f32.mxu0 (!%p186_p10), %v644_v0  ;;  %563 = vset.pattern.permute.xlu0 (!%p186_p10), %v645_v1  ;;  %v251_v17 = vld [vmem:[%s786_s1] sm:$0xff] (!%p186_p10)  ;;  %s219_s8 = sand.u32 (!%p186_p10), 1, %s626_s13  }
  0x10   : > { %356 = vperm.xlu0 (!%p186_p10), %563, %v353_v2   ;;  %s486_s9 = sshll.u32 (!%p186_p10), %s219_s8, 4  ;;  %s496_s10 = sshll.u32 (!%p186_p10), %s634_s15, 8 }
  0x11   : > { %s221_s11 = scalar_lea.vmem (!%p186_p10), [#allocation3], %s486_s9  ;;  %s738_s23 = scalar_lea.hbm (!%p186_p10), %s788_s3, %s496_s10 }
  0x12   : > { %s380_s18 = sshll.u32 (!%p186_p10), %s221_s11, 4  ;;  %s364_s26 = scalar_lea.sflag (!%p186_p10), [#allocation4], %s219_s8  ;;  %s740_s18 = int_to_ptr.vmem [resolvable:$true] %s380_s18 }
  0x13   : > { %s646_s27 = smov (!%p186_p10), [#allocation3]  }
  0x16   : > { %s225_s28 = scalar_select %p224_p11, %s634_s15, 1 }
  0x17   : > { %s564_s15 = scalar_lea.vmem %s740_s18, 256 }
  0x18   : > { %s505_s29 = smul.u32 80, %s225_s28  ;;  %p565_p12 = scmp.ne.s32.totalorder %s740_s18, %s564_s15 }
  0x19   : > { %s568_s28 = sshll.u32 %s646_s27, 4  ;;  %s569_s28 = int_to_ptr.vmem [resolvable:$false] %s568_s28 }
  0x1a   : > { %s235_s5 = scalar_lea.vmem %s785_s0, %s505_s29  ;;  %p566_p13 = pnand %p565_p12, %p707_p4 }
  0x1b   : > { %v253_v3 = vld [vmem:[%s235_s5 + $0x8] sm:$0xff]  ;;  %v255_v4 = vld [vmem:[%s235_s5 + $0x18] sm:$0xff]  ;;  %v252_v5 = vld [vmem:[%s235_s5] sm:$0xff]  ;;  %s570_s29 = scalar_lea.vmem %s569_s28, 512  ;;  %p571_p1 = scmp.lt.s32.totalorder %s740_s18, %s569_s28 }
  0x1c   : > { %v497_v6 = vpack.c.bf16 %v255_v4, %v253_v3  ;;  %v254_v7 = vld [vmem:[%s235_s5 + $0x10] sm:$0xff]  ;;  %v257_v8 = vld [vmem:[%s235_s5 + $0x28] sm:$0xff]  ;;  %v259_v9 = vld [vmem:[%s235_s5 + $0x38] sm:$0xff]  ;;  %p567_p0 = pneg %p566_p13  ;;  %p572_p2 = scmp.lt.s32.totalorder %s570_s29, %s564_s15 }
  0x1d   : > { %v499_v10 = vpack.c.bf16 %v254_v7, %v252_v5  ;;  %v501_v11 = vpack.c.bf16 %v259_v9, %v257_v8  ;;  %v256_v12 = vld [vmem:[%s235_s5 + $0x20] sm:$0xff]  ;;  %v258_v13 = vld [vmem:[%s235_s5 + $0x30] sm:$0xff]  ;;  %v261_v15 = vld [vmem:[%s235_s5 + $0x48] sm:$0xf] }
  0x1e   : > { %498 = vmatprep.subr.bf16.mxu0 %v497_v6  ;;  %v503_v14 = vpack.c.bf16 %v258_v13, %v256_v12  ;;  %v260_v16 = vld [vmem:[%s235_s5 + $0x40] sm:$0xf]  ;;  %p573_p3 = por %p572_p2, %p571_p1 }
  0x1f   : > { %500 = vmatpush1.bf16.msra.mxu0 %v499_v10 }
  0x20   : > { %502 = vmatprep.subr.bf16.mxu0 %v501_v11  ;;  %p574_p5 = pnand %p573_p3, %p567_p0 }
  0x23   : > { %504 = vmatpush1.bf16.msra.mxu0 %v503_v14 }
  0x24   : > { %488 = vmatprep.subr.msk.mxu0 %vm266_vm0, %v261_v15 }
  0x27   : > { %489 = vmatpush1.msk.msra.mxu0 %vm266_vm0, %v260_v16 }
  0x28   : > { %490 = vmatmul.mubr.msk.f32.vlgmr.msra.gmra.mrb[0].mxu0 %vm262_vm1, %v251_v17 }
  0x8f   : > { %v357_v18 = vpop.permute.xlu0 %356 }
  0xfb   : > { %v339_v19 = vpop.f32.mrb[0].mxu0 }
  0xfc   : > { %v359_v20 = vadd.f32 %v357_v18, %v339_v19  ;;  %v341_v21 = vpop.f32.mrb[1].mxu0 }
  0xfd   : > { %v360_v22 = vadd.f32 %v357_v18, %v341_v21 }
  0xfe   : > { %361 = vst [vmem:[%s221_s11] sm:$0xff] %v359_v20 }
  0xff   : > { %362 = vst [vmem:[%s221_s11 + $0x8] sm:$0xff] %v360_v22 }
 0x100   : > { %577 = shalt.err (!%p574_p5)
}
 0x101   : > { %s578_s30 = scalar_lea.hbm %s738_s23, 256  ;;  %s582_s6 = scalar_lea.hbm %s788_s3, 512 }
 0x102   : > { %p579_p6 = scmp.ne.s32.totalorder %s738_s23, %s578_s30  ;;  %p583_p10 = scmp.lt.u32.totalorder %s738_s23, %s788_s3 }
 0x103   : > { %p584_p11 = scmp.lt.u32.totalorder %s582_s6, %s578_s30  ;;  %p586_p13 = scmp.lt.u32.totalorder %s578_s30, %s738_s23 }
 0x104   : > { %p580_p7 = pnand %p579_p6, %p707_p4 }
 0x105   : > { %p585_p12 = por %p584_p11, %p583_p10 }
 0x106   : > { %p581_p9 = pneg %p580_p7 }
 0x107   : > { %p587_p0 = por %p586_p13, %p585_p12 }
 0x109   : > { %p588_p1 = pnand %p587_p0, %p581_p9 }
 0x10b   : > { %591 = shalt.err (!%p588_p1)
}
 0x10c   : > { %506 = dma.vmem_to_hbm [thread:$0]  (%p707_p4), %s740_s18, 256, %s738_s23, %s364_s26  }
 0x10d PF: > { %p512_p2 = scmp.ge.s32.totalorder %s642_s17, 2  ;;  %s392_s9 = sand.u32 1, %s622_s12  }
 0x10e   : > { %s393_s10 = scalar_lea.sflag [#allocation4], %s392_s9 }
 0x10f   : > { %p509_p3 = pnand %p512_p2, %p714_p8 }
 0x111   : > { %617 = dma.done.wait (!%p509_p3), %s393_s10, 256  }
 0x112   : > { %619 = vsyncadd (!%p509_p3), %s393_s10, 4294967040  ;;  %s16_s17 = sadd.s32 1, %s642_s17   ;;  %s791_s12 = smov %s626_s13 }
 0x113   : > { %p13_p5 = scmp.ge.s32.totalorder %s16_s17, 4   ;;  %s792_s13 = smov %s630_s14 }
 0x114   : > { %s793_s14 = smov %s720_s25  ;;  %s794_s15 = smov %s638_s16 }
 0x115   : > { %s795_s16 = smov %s797_s20  ;;  %15 = sbr.rel (!%p13_p5) target bundleno = 4 (0x4), region = 78 }
 0x11c   :  { %398 = vsyncpa [#allocation4], 1 }
 0x11d   :  { %400 = vsyncpa [#allocation4 + $0x1], 1 }

// kernel: tpu_custom_call.1
= control target key start
LH: loop header
LB: loop body
LE: loop exit
PB: predicated region body
PF: predicated region fallthrough
CT: control target
= control target key end

     0   :  { %8 = vsyncpa [#allocation4], 0  ;;  %s785_s0 = inlined_call_operand.vmem [shape: f32[2,36,256], index: 0, kind: input, shape index: {}]   ;;  %s786_s1 = inlined_call_operand.vmem [shape: f32[8,36], index: 1, kind: input, shape index: {}]   ;;  %s787_s2 = inlined_call_operand.vmem [shape: f32[8,1], index: 2, kind: input, shape index: {}]   ;;  %s788_s3 = inlined_call_operand.hbm [shape: f32[2,8,256], index: 3, kind: output, shape index: {}]  }
   0x1   :  { %10 = vsyncpa [#allocation4 + $0x1], 0  ;;  %s667_s12 = smov 0   ;;  %s669_s13 = smov 0  }
   0x2   :  { %s671_s14 = smov 0   ;;  %s673_s15 = smov 0  }
   0x3   :  { %s675_s16 = smov 0   ;;  %s677_s17 = smov 0  }
   0x4 LB: > { %s480_s18 = sadd.s32 4294967295, %s642_s17   ;;  %s481_s19 = sadd.s32 4294967294, %s642_s17   ;;  %s642_s17 = sphi %s677_s17, %s16_s17   ;;  %s638_s16 = sphi %s675_s16, %s795_s16   ;;  %s634_s15 = sphi %s673_s15, %s794_s15   ;;  %s630_s14 = sphi %s671_s14, %s793_s14   ;;  %s626_s13 = sphi %s669_s13, %s792_s13   ;;  %s622_s12 = sphi %s667_s12, %s791_s12  }
   0x5   : > { %s35_s20 = sadd.s32 1, %s638_s16  ;;  %s121_s21 = sadd.s32 1, %s630_s14 }
   0x6   : > { %p37_p0 = scmp.ge.s32.totalorder %s35_s20, 2  ;;  %p131_p1 = scmp.ne.s32.totalorder %s630_s14, %s626_s13 }
   0x7   : > { %p132_p2 = scmp.eq.s32.totalorder %s480_s18, 1  ;;  %p137_p3 = scmp.ne.s32.totalorder %s626_s13, %s622_s12 }
   0x8   : > { %s797_s20 = smov (%p37_p0, %s35_s20), 0  ;;  %p138_p5 = scmp.eq.s32.totalorder %s481_s19, 1 }
   0x9   : > { %p707_p4 = por %p132_p2, %p131_p1  ;;  %s116_s23 = ssub.s32 %s638_s16, %s797_s20 }
   0xa   : > { %p485_p6 = scmp.ge.s32.totalorder %s642_s17, 1  ;;  %p119_p7 = scmp.eq.s32.totalorder %s116_s23, 0 }
   0xb   : > { %p714_p8 = por %p138_p5, %p137_p3  ;;  %p185_p9 = scmp.lt.s32.totalorder %s642_s17, 3 }
   0xc   : > { %s720_s25 = scalar_select %p119_p7, %s630_s14, %s121_s21  }
   0xd   : > { %p186_p10 = pnand %p485_p6, %p185_p9 }
   0xe   : > { %p224_p11 = scmp.lt.s32.totalorder (!%p186_p10), %s634_s15, 1  ;;  %v644_v0 = vmov (!%p186_p10), 0.0   ;;  %v645_v1 = vmov (!%p186_p10), 0   ;;  %v353_v2 = vld [vmem:[%s787_s2] sm:$0xff] (!%p186_p10)  ;;  %vm266_vm0 = vcmask (!%p186_p10), 1043456   ;;  %vm262_vm1 = vcmask (!%p186_p10), 293888  }
   0xf   : > { %189 = sbr.rel (%p186_p10) target bundleno = 269 (0x10d), region = 32  ;;  %337 = vmatprep.mubr.f32.mxu0 (!%p186_p10), %v644_v0  ;;  %563 = vset.pattern.permute.xlu0 (!%p186_p10), %v645_v1  ;;  %v251_v17 = vld [vmem:[%s786_s1] sm:$0xff] (!%p186_p10)  ;;  %s219_s8 = sand.u32 (!%p186_p10), 1, %s626_s13  }
  0x10   : > { %356 = vperm.xlu0 (!%p186_p10), %563, %v353_v2   ;;  %s486_s9 = sshll.u32 (!%p186_p10), %s219_s8, 4  ;;  %s496_s10 = sshll.u32 (!%p186_p10), %s634_s15, 8 }
  0x11   : > { %s221_s11 = scalar_lea.vmem (!%p186_p10), [#allocation3], %s486_s9  ;;  %s738_s23 = scalar_lea.hbm (!%p186_p10), %s788_s3, %s496_s10 }
  0x12   : > { %s380_s18 = sshll.u32 (!%p186_p10), %s221_s11, 4  ;;  %s364_s26 = scalar_lea.sflag (!%p186_p10), [#allocation4], %s219_s8  ;;  %s740_s18 = int_to_ptr.vmem [resolvable:$true] %s380_s18 }
  0x13   : > { %s646_s27 = smov (!%p186_p10), [#allocation3]  }
  0x16   : > { %s225_s28 = scalar_select %p224_p11, %s634_s15, 1 }
  0x17   : > { %s564_s15 = scalar_lea.vmem %s740_s18, 256 }
  0x18   : > { %s505_s29 = smul.u32 80, %s225_s28  ;;  %p565_p12 = scmp.ne.s32.totalorder %s740_s18, %s564_s15 }
  0x19   : > { %s568_s28 = sshll.u32 %s646_s27, 4  ;;  %s569_s28 = int_to_ptr.vmem [resolvable:$false] %s568_s28 }
  0x1a   : > { %s235_s5 = scalar_lea.vmem %s785_s0, %s505_s29  ;;  %p566_p13 = pnand %p565_p12, %p707_p4 }
  0x1b   : > { %v253_v3 = vld [vmem:[%s235_s5 + $0x8] sm:$0xff]  ;;  %v255_v4 = vld [vmem:[%s235_s5 + $0x18] sm:$0xff]  ;;  %v252_v5 = vld [vmem:[%s235_s5] sm:$0xff]  ;;  %s570_s29 = scalar_lea.vmem %s569_s28, 512  ;;  %p571_p1 = scmp.lt.s32.totalorder %s740_s18, %s569_s28 }
  0x1c   : > { %v497_v6 = vpack.c.bf16 %v255_v4, %v253_v3  ;;  %v254_v7 = vld [vmem:[%s235_s5 + $0x10] sm:$0xff]  ;;  %v257_v8 = vld [vmem:[%s235_s5 + $0x28] sm:$0xff]  ;;  %v259_v9 = vld [vmem:[%s235_s5 + $0x38] sm:$0xff]  ;;  %p567_p0 = pneg %p566_p13  ;;  %p572_p2 = scmp.lt.s32.totalorder %s570_s29, %s564_s15 }
  0x1d   : > { %v499_v10 = vpack.c.bf16 %v254_v7, %v252_v5  ;;  %v501_v11 = vpack.c.bf16 %v259_v9, %v257_v8  ;;  %v256_v12 = vld [vmem:[%s235_s5 + $0x20] sm:$0xff]  ;;  %v258_v13 = vld [vmem:[%s235_s5 + $0x30] sm:$0xff]  ;;  %v261_v15 = vld [vmem:[%s235_s5 + $0x48] sm:$0xf] }
  0x1e   : > { %498 = vmatprep.subr.bf16.mxu0 %v497_v6  ;;  %v503_v14 = vpack.c.bf16 %v258_v13, %v256_v12  ;;  %v260_v16 = vld [vmem:[%s235_s5 + $0x40] sm:$0xf]  ;;  %p573_p3 = por %p572_p2, %p571_p1 }
  0x1f   : > { %500 = vmatpush1.bf16.msra.mxu0 %v499_v10 }
  0x20   : > { %502 = vmatprep.subr.bf16.mxu0 %v501_v11  ;;  %p574_p5 = pnand %p573_p3, %p567_p0 }
  0x23   : > { %504 = vmatpush1.bf16.msra.mxu0 %v503_v14 }
  0x24   : > { %488 = vmatprep.subr.msk.mxu0 %vm266_vm0, %v261_v15 }
  0x27   : > { %489 = vmatpush1.msk.msra.mxu0 %vm266_vm0, %v260_v16 }
  0x28   : > { %490 = vmatmul.mubr.msk.f32.vlgmr.msra.gmra.mrb[0].mxu0 %vm262_vm1, %v251_v17 }
  0x8f   : > { %v357_v18 = vpop.permute.xlu0 %356 }
  0xfb   : > { %v339_v19 = vpop.f32.mrb[0].mxu0 }
  0xfc   : > { %v359_v20 = vadd.f32 %v357_v18, %v339_v19  ;;  %v341_v21 = vpop.f32.mrb[1].mxu0 }
  0xfd   : > { %v360_v22 = vadd.f32 %v357_v18, %v341_v21 }
  0xfe   : > { %361 = vst [vmem:[%s221_s11] sm:$0xff] %v359_v20 }
  0xff   : > { %362 = vst [vmem:[%s221_s11 + $0x8] sm:$0xff] %v360_v22 }
 0x100   : > { %577 = shalt.err (!%p574_p5)
}
 0x101   : > { %s578_s30 = scalar_lea.hbm %s738_s23, 256  ;;  %s582_s6 = scalar_lea.hbm %s788_s3, 512 }
 0x102   : > { %p579_p6 = scmp.ne.s32.totalorder %s738_s23, %s578_s30  ;;  %p583_p10 = scmp.lt.u32.totalorder %s738_s23, %s788_s3 }
 0x103   : > { %p584_p11 = scmp.lt.u32.totalorder %s582_s6, %s578_s30  ;;  %p586_p13 = scmp.lt.u32.totalorder %s578_s30, %s738_s23 }
 0x104   : > { %p580_p7 = pnand %p579_p6, %p707_p4 }
 0x105   : > { %p585_p12 = por %p584_p11, %p583_p10 }
 0x106   : > { %p581_p9 = pneg %p580_p7 }
 0x107   : > { %p587_p0 = por %p586_p13, %p585_p12 }
 0x109   : > { %p588_p1 = pnand %p587_p0, %p581_p9 }
 0x10b   : > { %591 = shalt.err (!%p588_p1)
}
 0x10c   : > { %506 = dma.vmem_to_hbm [thread:$0]  (%p707_p4), %s740_s18, 256, %s738_s23, %s364_s26  }
 0x10d PF: > { %p512_p2 = scmp.ge.s32.totalorder %s642_s17, 2  ;;  %s392_s9 = sand.u32 1, %s622_s12  }
 0x10e   : > { %s393_s10 = scalar_lea.sflag [#allocation4], %s392_s9 }
 0x10f   : > { %p509_p3 = pnand %p512_p2, %p714_p8 }
 0x111   : > { %617 = dma.done.wait (!%p509_p3), %s393_s10, 256  }
 0x112   : > { %619 = vsyncadd (!%p509_p3), %s393_s10, 4294967040  ;;  %s16_s17 = sadd.s32 1, %s642_s17   ;;  %s791_s12 = smov %s626_s13 }
 0x113   : > { %p13_p5 = scmp.ge.s32.totalorder %s16_s17, 4   ;;  %s792_s13 = smov %s630_s14 }
 0x114   : > { %s793_s14 = smov %s720_s25  ;;  %s794_s15 = smov %s638_s16 }
 0x115   : > { %s795_s16 = smov %s797_s20  ;;  %15 = sbr.rel (!%p13_p5) target bundleno = 4 (0x4), region = 78 }
 0x11c   :  { %398 = vsyncpa [#allocation4], 1 }
 0x11d   :  { %400 = vsyncpa [#allocation4 + $0x1], 1 }

</bundles_post_ra>
